<compile_context>
chip_gen: v7x
topology: tpu7x:2x2x1
jax: 0.10.0
libtpu: 0.0.40
codegen_flags: <defaults>
</compile_context>

<pallas_src>
import functools

import jax
import jax.numpy as jnp
from jax.experimental import pallas as pl
from jax.experimental.pallas import tpu as pltpu


def _round_up(x, m):
    return (x + m - 1) // m * m


def _cdiv(a, b):
    return (a + b - 1) // b


def _aggregate_ff_kernel(v1_ref, v2_ref, w1a_ref, w1b_ref, b1_ref,
                         w2_ref, b2_ref, o_ref):
    cdt = w1a_ref.dtype
    # Cast activations to the MXU compute dtype in-kernel (no wrapper pre-pass).
    v1 = v1_ref[...].astype(cdt)
    v2 = v2_ref[...].astype(cdt)
    # First linear: concat folded into two matmuls (MXU, f32 accumulation).
    h = (jnp.dot(v1, w1a_ref[...], preferred_element_type=jnp.float32)
         + jnp.dot(v2, w1b_ref[...], preferred_element_type=jnp.float32))
    # Bias add + ReLU in f32 on the VPU (v5e-safe).
    h = jnp.maximum(h + b1_ref[...], 0.0)
    # Second linear: (tb, H_pad) @ (H_pad, 2); bf16 operands, f32 accumulation.
    y = (jnp.dot(h.astype(cdt), w2_ref[...], preferred_element_type=jnp.float32)
         + b2_ref[...])
    o_ref[...] = y.astype(o_ref.dtype)


def prepare_params(w1, b1, w2, b2, compute_dtype=jnp.bfloat16):
    """One-time weight preprocessing (hoisted out of the per-call path).

    w1: (H, 2H) PyTorch layout, b1: (H,), w2: (2, H), b2: (2,).
    Only the weights' output (N) dim / the second-dot K dim are lane-padded;
    activations are consumed unpadded by the kernel."""
    H = b1.shape[0]
    assert w1.shape == (H, 2 * H) and w2.shape == (2, H)
    H_pad = _round_up(H, 128)

    w1_t = w1.T.astype(jnp.float32)                      # (2H, H), (in, out)
    # Split into the v1 / v2 halves; pad only the OUTPUT (N) dim to 128.
    w1a = jnp.zeros((H, H_pad), jnp.float32).at[:, :H].set(w1_t[:H])
    w1b = jnp.zeros((H, H_pad), jnp.float32).at[:, :H].set(w1_t[H:])
    w1a = w1a.astype(compute_dtype)
    w1b = w1b.astype(compute_dtype)
    b1_p = jnp.zeros((1, H_pad), jnp.float32).at[0, :H].set(b1.astype(jnp.float32))
    w2_t = jnp.zeros((H_pad, 2), jnp.float32).at[:H, :].set(
        w2.T.astype(jnp.float32)).astype(compute_dtype)
    b2_p = b2.reshape(1, 2).astype(jnp.float32)
    return (w1a, w1b, b1_p, w2_t, b2_p)


@functools.partial(jax.jit, static_argnames=("max_tb",))
def aggregate_feed_forward(v1, v2, params, max_tb=1024):
    """v1, v2: (B, H) f32.  params: output of prepare_params.  Returns (B, 2) f32."""
    w1a, w1b, b1_p, w2_t, b2_p = params
    B, H = v1.shape
    H_pad = b1_p.shape[1]
    compute_dtype = w1a.dtype

    # Batch tiling: balance tiles to minimize padding waste and aim for at
    # least 2 grid steps when B allows (so the "parallel" batch axis shards
    # across v7x's two TensorCores; no-op on single-TC v5e/v6e).
    row_align = 16 if compute_dtype == jnp.bfloat16 else 8
    num_tiles = max(_cdiv(B, max_tb), 2 if B >= 2 * row_align else 1)
    tb = _round_up(_cdiv(B, num_tiles), row_align)
    grid = (_cdiv(B, tb),)

    act_spec = pl.BlockSpec((tb, H), lambda i: (i, 0))       # unpadded activations
    resident = lambda shape: pl.BlockSpec(shape, lambda i: (0, 0))

    # Scoped-VMEM budget: resident W1 halves dominate at large H; raise the
    # limit (above all default scoped limits) but cap under v7x's 64 MiB.
    itemsize = jnp.dtype(compute_dtype).itemsize
    vmem_est = (2 * 2 * tb * H * v1.dtype.itemsize            # v1/v2, double-buffered
                + 2 * tb * 2 * 4                              # output, double-buffered
                + 2 * (2 * H * H_pad + 2 * H_pad) * itemsize  # resident weights
                + 2 * (H_pad + 2) * 4                         # resident biases
                + 2 * tb * H_pad * 4)                         # intermediate headroom
    vmem_limit = int(min(max(2 * vmem_est, 32 << 20), 60 << 20))

    out = pl.pallas_call(
        _aggregate_ff_kernel,
        out_shape=jax.ShapeDtypeStruct((B, 2), jnp.float32),
        grid=grid,
        in_specs=[
            act_spec,                      # v1 tile (f32; cast in-kernel)
            act_spec,                      # v2 tile
            resident((H, H_pad)),          # w1a (VMEM-resident)
            resident((H, H_pad)),          # w1b (VMEM-resident)
            resident((1, H_pad)),          # b1
            resident((H_pad, 2)),          # w2_t
            resident((1, 2)),              # b2
        ],
        out_specs=pl.BlockSpec((tb, 2), lambda i: (i, 0)),
        compiler_params=pltpu.CompilerParams(
            dimension_semantics=("parallel",),
            vmem_limit_bytes=vmem_limit),
    )(v1, v2, w1a, w1b, b1_p, w2_t, b2_p)
    return out


def _init_linear(key, in_features, out_features):
    """Deterministic PyTorch-style uniform(-1/sqrt(in), 1/sqrt(in)) init."""
    kw, kb = jax.random.split(key)
    bound = 1.0 / jnp.sqrt(jnp.float32(in_features))
    w = jax.random.uniform(kw, (out_features, in_features), jnp.float32,
                           -bound, bound)
    b = jax.random.uniform(kb, (out_features,), jnp.float32, -bound, bound)
    return w, b


def _reference(v1, v2, w1, b1, w2, b2):
    inp = jnp.concatenate([v1, v2], axis=1)
    h = jnp.maximum(inp @ w1.T + b1, 0.0)
    return h @ w2.T + b2


if __name__ == "__main__":
    hidden_size = 32
    batch = 8

    key = jax.random.PRNGKey(0)
    k_v1, k_v2, k_l1, k_l2 = jax.random.split(key, 4)

    v1 = jax.random.normal(k_v1, (batch, hidden_size), jnp.float32)
    v2 = jax.random.normal(k_v2, (batch, hidden_size), jnp.float32)

    # nn.Linear(hidden_size * 2, hidden_size) and nn.Linear(hidden_size, 2)
    w1, b1 = _init_linear(k_l1, hidden_size * 2, hidden_size)
    w2, b2 = _init_linear(k_l2, hidden_size, 2)

    y_ref = _reference(v1, v2, w1, b1, w2, b2)

    # f32 compute path: tight check against the reference.
    params_f32 = prepare_params(w1, b1, w2, b2, compute_dtype=jnp.float32)
    y_f32 = jax.block_until_ready(aggregate_feed_forward(v1, v2, params_f32))
    assert y_f32.shape == (batch, 2)
    assert jnp.allclose(y_f32, y_ref, atol=1e-5, rtol=1e-5), "f32 mismatch"

    # bf16 MXU fast path (default on all gens), f32 accumulation: looser tolerance.
    params_bf16 = prepare_params(w1, b1, w2, b2, compute_dtype=jnp.bfloat16)
    y_bf16 = jax.block_until_ready(aggregate_feed_forward(v1, v2, params_bf16))
    assert y_bf16.shape == (batch, 2)
    assert jnp.allclose(y_bf16, y_ref, atol=1e-1, rtol=5e-2), "bf16 mismatch"

    print("KERNEL_OK")
</pallas_src>

<mosaic_0001>
module attributes {stable_mosaic.version = 11 : i64} {
  func.func @_aggregate_ff_kernel(%arg0: i32, %arg1: memref<8x32xf32, #tpu.memory_space<vmem>>, %arg2: memref<8x32xf32, #tpu.memory_space<vmem>>, %arg3: memref<32x128xf32, #tpu.memory_space<vmem>>, %arg4: memref<32x128xf32, #tpu.memory_space<vmem>>, %arg5: memref<1x128xf32, #tpu.memory_space<vmem>>, %arg6: memref<128x2xf32, #tpu.memory_space<vmem>>, %arg7: memref<1x2xf32, #tpu.memory_space<vmem>>, %arg8: memref<8x2xf32, #tpu.memory_space<vmem>>) attributes {dimension_semantics = [#tpu.dimension_semantics<parallel>], iteration_bounds = array<i64: 1>, scalar_prefetch = 0 : i64, scratch_operands = 0 : i64, tpu.core_type = #tpu.core_type<tc>, window_params = [{transform_indices = @transform_0, window_bounds = array<i64: 8, 32>}, {transform_indices = @transform_1, window_bounds = array<i64: 8, 32>}, {pipeline_mode = #tpu.pipeline_mode<synchronous>, transform_indices = @transform_2, window_bounds = array<i64: 32, 128>}, {pipeline_mode = #tpu.pipeline_mode<synchronous>, transform_indices = @transform_3, window_bounds = array<i64: 32, 128>}, {pipeline_mode = #tpu.pipeline_mode<synchronous>, transform_indices = @transform_4, window_bounds = array<i64: 1, 128>}, {pipeline_mode = #tpu.pipeline_mode<synchronous>, transform_indices = @transform_5, window_bounds = array<i64: 128, 2>}, {pipeline_mode = #tpu.pipeline_mode<synchronous>, transform_indices = @transform_6, window_bounds = array<i64: 1, 2>}, {transform_indices = @transform_7, window_bounds = array<i64: 8, 2>}]} {
    %c0 = arith.constant 0 : index
    %c0_0 = arith.constant 0 : index
    %0 = vector.load %arg1[%c0, %c0_0] : memref<8x32xf32, #tpu.memory_space<vmem>>, vector<8x32xf32>
    %c0_1 = arith.constant 0 : index
    %c0_2 = arith.constant 0 : index
    %1 = vector.load %arg2[%c0_1, %c0_2] : memref<8x32xf32, #tpu.memory_space<vmem>>, vector<8x32xf32>
    %c0_3 = arith.constant 0 : index
    %c0_4 = arith.constant 0 : index
    %2 = vector.load %arg3[%c0_3, %c0_4] : memref<32x128xf32, #tpu.memory_space<vmem>>, vector<32x128xf32>
    %cst = arith.constant dense<0.000000e+00> : vector<8x128xf32>
    %3 = tpu.matmul %0, %2, %cst {dimension_numbers = #tpu.dot_dimension_numbers<[1], [0], [0], [1], [0, 0, 1, 1], [], []>} : vector<8x32xf32>, vector<32x128xf32>, vector<8x128xf32> -> vector<8x128xf32>
    %c0_5 = arith.constant 0 : index
    %c0_6 = arith.constant 0 : index
    %4 = vector.load %arg4[%c0_5, %c0_6] : memref<32x128xf32, #tpu.memory_space<vmem>>, vector<32x128xf32>
    %cst_7 = arith.constant dense<0.000000e+00> : vector<8x128xf32>
    %5 = tpu.matmul %1, %4, %cst_7 {dimension_numbers = #tpu.dot_dimension_numbers<[1], [0], [0], [1], [0, 0, 1, 1], [], []>} : vector<8x32xf32>, vector<32x128xf32>, vector<8x128xf32> -> vector<8x128xf32>
    %6 = arith.addf %3, %5 : vector<8x128xf32>
    %c0_8 = arith.constant 0 : index
    %c0_9 = arith.constant 0 : index
    %7 = vector.load %arg5[%c0_8, %c0_9] : memref<1x128xf32, #tpu.memory_space<vmem>>, vector<1x128xf32>
    %8 = vector.broadcast %7 : vector<1x128xf32> to vector<8x128xf32>
    %9 = arith.addf %6, %8 : vector<8x128xf32>
    %cst_10 = arith.constant 0.000000e+00 : f32
    %10 = vector.broadcast %cst_10 : f32 to vector<8x128xf32>
    %11 = arith.maximumf %9, %10 : vector<8x128xf32>
    %c0_11 = arith.constant 0 : index
    %c0_12 = arith.constant 0 : index
    %12 = vector.load %arg6[%c0_11, %c0_12] : memref<128x2xf32, #tpu.memory_space<vmem>>, vector<128x2xf32>
    %cst_13 = arith.constant dense<0.000000e+00> : vector<8x2xf32>
    %13 = tpu.matmul %11, %12, %cst_13 {dimension_numbers = #tpu.dot_dimension_numbers<[1], [0], [0], [1], [0, 0, 1, 1], [], []>} : vector<8x128xf32>, vector<128x2xf32>, vector<8x2xf32> -> vector<8x2xf32>
    %c0_14 = arith.constant 0 : index
    %c0_15 = arith.constant 0 : index
    %14 = vector.load %arg7[%c0_14, %c0_15] : memref<1x2xf32, #tpu.memory_space<vmem>>, vector<1x2xf32>
    %15 = vector.broadcast %14 : vector<1x2xf32> to vector<8x2xf32>
    %16 = arith.addf %13, %15 : vector<8x2xf32>
    %c0_16 = arith.constant 0 : index
    %c0_17 = arith.constant 0 : index
    %17 = vector.load %arg8[%c0_16, %c0_17] : memref<8x2xf32, #tpu.memory_space<vmem>>, vector<8x2xf32>
    tpu.vector_store %arg8[%c0_16, %c0_17], %16 {strides = array<i32>} : memref<8x2xf32, #tpu.memory_space<vmem>>, vector<8x2xf32>,
    return
  }
  func.func @transform_0(%arg0: i32) -> (i32, i32) {
    %c0_i32 = arith.constant 0 : i32
    %c0_i32_0 = arith.constant 0 : i32
    return %arg0, %c0_i32 : i32, i32
  }
  func.func @transform_1(%arg0: i32) -> (i32, i32) {
    %c0_i32 = arith.constant 0 : i32
    %c0_i32_0 = arith.constant 0 : i32
    return %arg0, %c0_i32 : i32, i32
  }
  func.func @transform_2(%arg0: i32) -> (i32, i32) {
    %c0_i32 = arith.constant 0 : i32
    %c0_i32_0 = arith.constant 0 : i32
    %c0_i32_1 = arith.constant 0 : i32
    return %c0_i32, %c0_i32_0 : i32, i32
  }
  func.func @transform_3(%arg0: i32) -> (i32, i32) {
    %c0_i32 = arith.constant 0 : i32
    %c0_i32_0 = arith.constant 0 : i32
    %c0_i32_1 = arith.constant 0 : i32
    return %c0_i32, %c0_i32_0 : i32, i32
  }
  func.func @transform_4(%arg0: i32) -> (i32, i32) {
    %c0_i32 = arith.constant 0 : i32
    %c0_i32_0 = arith.constant 0 : i32
    %c0_i32_1 = arith.constant 0 : i32
    return %c0_i32, %c0_i32_0 : i32, i32
  }
  func.func @transform_5(%arg0: i32) -> (i32, i32) {
    %c0_i32 = arith.constant 0 : i32
    %c0_i32_0 = arith.constant 0 : i32
    %c0_i32_1 = arith.constant 0 : i32
    return %c0_i32, %c0_i32_0 : i32, i32
  }
  func.func @transform_6(%arg0: i32) -> (i32, i32) {
    %c0_i32 = arith.constant 0 : i32
    %c0_i32_0 = arith.constant 0 : i32
    %c0_i32_1 = arith.constant 0 : i32
    return %c0_i32, %c0_i32_0 : i32, i32
  }
  func.func @transform_7(%arg0: i32) -> (i32, i32) {
    %c0_i32 = arith.constant 0 : i32
    %c0_i32_0 = arith.constant 0 : i32
    return %arg0, %c0_i32 : i32, i32
  }
}

</mosaic_0001>

<bundles_post_ra>
// kernel: aggregate_feed_forward.1
= control target key start
LH: loop header
LB: loop body
LE: loop exit
PB: predicated region body
PF: predicated region fallthrough
CT: control target
= control target key end

     0   :  { %v418_v0 = vmov 0.0|0.0   ;;  %vm419_vm0 = vmmov 0   ;;  %v420_v4 = vmov 0.0   ;;  %vm36_vm1 = vcmask 261120   ;;  %s565_s3 = inlined_call_operand.vmem [shape: f32[32,128], index: 3, kind: input, shape index: {}]   ;;  %s566_s2 = inlined_call_operand.vmem [shape: f32[32,128], index: 2, kind: input, shape index: {}]   ;;  %s567_s5 = inlined_call_operand.vmem [shape: f32[128,2], index: 5, kind: input, shape index: {}]   ;;  %s568_s1 = inlined_call_operand.vmem [shape: f32[8,32], index: 1, kind: input, shape index: {}]   ;;  %s569_s0 = inlined_call_operand.vmem [shape: f32[8,32], index: 0, kind: input, shape index: {}]   ;;  %s570_s4 = inlined_call_operand.vmem [shape: f32[1,128], index: 4, kind: input, shape index: {}]   ;;  %s571_s6 = inlined_call_operand.vmem [shape: f32[1,2], index: 6, kind: input, shape index: {}]   ;;  %s572_s7 = inlined_call_operand.vmem [shape: f32[8,2], index: 7, kind: output, shape index: {}]  }
   0x1   :  { %379 = vmatprep.subr.bf16.mxu1 %v418_v0  ;;  %v32_v1 = vld [vmem:[%s565_s3] sm:$0xff]  ;;  %v33_v2 = vld [vmem:[%s565_s3 + $0x8] sm:$0xff]  ;;  %v34_v3 = vld [vmem:[%s565_s3 + $0x10] sm:$0xff]  ;;  %330 = vmatprep.mubr.msk.f32.mxu1 %vm419_vm0, %v420_v4  ;;  %vm285_vm2 = vcmask 15360  }
   0x2   :  { %v380_v5 = vpack.c.bf16 %v33_v2, %v32_v1  ;;  %v35_v6 = vld [vmem:[%s565_s3 + $0x18] sm:$0xff]  ;;  %391 = vmatprep.subr.bf16.mxu0 %v418_v0  ;;  %376 = vmatprep.mubr.msk.f32.mxu0 %vm419_vm0, %v420_v4  ;;  %v28_v8 = vld [vmem:[%s566_s2] sm:$0xff]  ;;  %v193_v10 = vld [vmem:[%s567_s5 + $0x8] sm:$0xff] }
   0x3   :  { %v383_v7 = vpack.c.bf16 %v35_v6, %v34_v3  ;;  %v192_v9 = vld [vmem:[%s567_s5] sm:$0xff]  ;;  %v29_v11 = vld [vmem:[%s566_s2 + $0x8] sm:$0xff]  ;;  %v194_v13 = vld [vmem:[%s567_s5 + $0x10] sm:$0xff] }
   0x4   :  { %381 = vmatpush3.bf16.msra.mxu1 %v380_v5  ;;  %v392_v12 = vpack.c.bf16 %v193_v10, %v192_v9  ;;  %v195_v14 = vld [vmem:[%s567_s5 + $0x18] sm:$0xff]  ;;  %v27_v16 = vld [vmem:[%s568_s1] sm:$0xff]  ;;  %v386_v17 = vpack.c.bf16 %v29_v11, %v28_v8  ;;  %v197_v19 = vld [vmem:[%s567_s5 + $0x28] sm:$0xff] }
   0x5   :  { %382 = vmatprep.subr.bf16.mxu1 %v418_v0  ;;  %v395_v15 = vpack.c.bf16 %v195_v14, %v194_v13  ;;  %v196_v18 = vld [vmem:[%s567_s5 + $0x20] sm:$0xff]  ;;  %v30_v20 = vld [vmem:[%s566_s2 + $0x10] sm:$0xff]  ;;  %v31_v21 = vld [vmem:[%s566_s2 + $0x18] sm:$0xff] }
   0x6   :  { %393 = vmatpush3.bf16.msra.mxu0 %v392_v12  ;;  %v398_v22 = vpack.c.bf16 %v197_v19, %v196_v18  ;;  %v389_v23 = vpack.c.bf16 %v31_v21, %v30_v20  ;;  %v198_v24 = vld [vmem:[%s567_s5 + $0x30] sm:$0xff]  ;;  %v199_v25 = vld [vmem:[%s567_s5 + $0x38] sm:$0xff]  ;;  %v26_v27 = vld [vmem:[%s569_s0] sm:$0xff] }
   0x7   :  { %394 = vmatprep.subr.bf16.mxu0 %v418_v0  ;;  %v401_v26 = vpack.c.bf16 %v199_v25, %v198_v24  ;;  %v200_v28 = vld [vmem:[%s567_s5 + $0x40] sm:$0xff]  ;;  %v201_v29 = vld [vmem:[%s567_s5 + $0x48] sm:$0xff]  ;;  %v202_v31 = vld [vmem:[%s567_s5 + $0x50] sm:$0xff] }
   0x8   :  { %384 = vmatpush3.bf16.msra.mxu1 %v383_v7  ;;  %v404_v30 = vpack.c.bf16 %v201_v29, %v200_v28  ;;  %v203_v32 = vld [vmem:[%s567_s5 + $0x58] sm:$0xff]  ;;  %v204_v34 = vld [vmem:[%s567_s5 + $0x60] sm:$0xff]  ;;  %v205_v35 = vld [vmem:[%s567_s5 + $0x68] sm:$0xff] }
   0x9   :  { %385 = vmatprep.subr.bf16.mxu1 %v418_v0  ;;  %v407_v33 = vpack.c.bf16 %v203_v32, %v202_v31  ;;  %v410_v36 = vpack.c.bf16 %v205_v35, %v204_v34  ;;  %v206_v37 = vld [vmem:[%s567_s5 + $0x70] sm:$0xff]  ;;  %v207_v38 = vld [vmem:[%s567_s5 + $0x78] sm:$0xff]  ;;  %v293_v43 = vld [vmem:[%s570_s4] ss:$0 sm:$0xff] }
   0xa   :  { %396 = vmatpush3.bf16.msra.mxu0 %v395_v15  ;;  %v413_v39 = vpack.c.bf16 %v207_v38, %v206_v37  ;;  %v294_v48 = vld [vmem:[%s571_s6] ss:$0 sm:$0xff] }
   0xb   :  { %331 = vmatmul.mubr.msk.f32.vlgmr.msra.gmra.mrb[0].mxu1 %vm36_vm1, %v27_v16  ;;  %397 = vmatprep.subr.bf16.mxu0 %v418_v0 }
   0xc   :  { %387 = vmatpush3.bf16.msra.mxu1 %v386_v17  ;;  %341 = vmatprep.mubr.msk.f32.mxu1 %vm419_vm0, %v420_v4 }
   0xd   :  { %388 = vmatprep.subr.bf16.mxu1 %v418_v0 }
   0xe   :  { %399 = vmatpush3.bf16.msra.mxu0 %v398_v22 }
   0xf   :  { %400 = vmatprep.subr.bf16.mxu0 %v418_v0 }
  0x10   :  { %390 = vmatpush3.bf16.msra.mxu1 %v389_v23 }
  0x12   :  { %402 = vmatpush3.bf16.msra.mxu0 %v401_v26 }
  0x13   :  { %342 = vmatmul.mubr.msk.f32.vlgmr.msra.gmra.mrb[2].mxu1 %vm36_vm1, %v26_v27  ;;  %403 = vmatprep.subr.bf16.mxu0 %v418_v0 }
  0x16   :  { %405 = vmatpush3.bf16.msra.mxu0 %v404_v30 }
  0x17   :  { %406 = vmatprep.subr.bf16.mxu0 %v418_v0 }
  0x1a   :  { %408 = vmatpush3.bf16.msra.mxu0 %v407_v33 }
  0x1b   :  { %409 = vmatprep.subr.bf16.mxu0 %v418_v0 }
  0x1e   :  { %411 = vmatpush3.bf16.msra.mxu0 %v410_v36 }
  0x1f   :  { %412 = vmatprep.subr.bf16.mxu0 %v418_v0 }
  0x22   :  { %414 = vmatpush3.bf16.msra.mxu0 %v413_v39 }
  0xde   :  { %v106_v40 = vpop.f32.mrb[0].mxu1 }
  0xdf   :  { %v332_v41 = vpop.f32.mrb[1].mxu1 }
  0xe6   :  { %v179_v42 = vpop.f32.mrb[2].mxu1 }
  0xe7   :  { %v180_v44 = vadd.f32 %v179_v42, %v106_v40  ;;  %v343_v45 = vpop.f32.mrb[3].mxu1 }
  0xe9   :  { %v190_v46 = vadd.f32 %v293_v43, %v180_v44 }
  0xeb   :  { %v191_v47 = vmax.f32 %v190_v46, 0.0 }
  0xed   :  { %377 = vmatmul.mubr.f32.vlgmr.msra.gmra.mrb[0].mxu0 %v191_v47 }
 0x1c0   :  { %v281_v49 = vpop.f32.mrb[0].mxu0 }
 0x1c1   :  { %v282_v50 = vadd.f32 %v294_v48, %v281_v49  ;;  %v378_v51 = vpop.f32.mrb[1].mxu0 }
 0x1c3   :  { %286 = vst.msk [vmem:[%s572_s7] sm:$0xff] %vm285_vm2, %v282_v50 }

</bundles_post_ra>
